<compile_context>
chip_gen: v7x
topology: tpu7x:2x2x1
jax: 0.10.0
libtpu: 0.0.40
codegen_flags: <defaults>
</compile_context>

<pallas_src>
import functools

import jax
import jax.numpy as jnp
from jax.experimental import pallas as pl
from jax.experimental.pallas import tpu as pltpu


DEFAULT_TILE_N = 4096  # lanes per grid step; multiple of 128


def _round_up(x, m):
    return ((x + m - 1) // m) * m


def _mlp_kernel(u_ref,
                w1_ref, b1_ref,
                w2_ref, b2_ref,
                w3_ref, b3_ref,
                w4_ref, b4_ref,
                w5_ref, b5_ref,
                o_ref):
    """One batch tile (batch along lanes) of the fused 5-layer MLP forward.

    u_ref: (2, TILE_N)      row 0 = x, row 1 = t
    wK_ref: transposed weights (out, in); bK_ref: (out, 1) biases (f32).
    o_ref: (1, TILE_N)
    """
    u = u_ref[...]                                   # (2, TILE_N) f32
    w1 = w1_ref[...]                                 # (80, 2) f32

    # Layer 1: K=2 contraction is a degenerate MXU op -> two VPU broadcast FMAs
    # ((80,1) x (1,TILE_N) broadcasts; no cross-lane data movement needed).
    h = w1[:, 0:1] * u[0:1, :] + w1[:, 1:2] * u[1:2, :] + b1_ref[...]   # (80, TILE_N)

    cdt = w2_ref.dtype   # MXU operand dtype (bf16 by default, f32 accumulate)

    # Hidden layers on the MXU (f32 accumulation), tanh on the EUP in f32.
    h = jnp.dot(w2_ref[...], jnp.tanh(h).astype(cdt),
                preferred_element_type=jnp.float32) + b2_ref[...]       # (80, TILE_N)
    h = jnp.dot(w3_ref[...], jnp.tanh(h).astype(cdt),
                preferred_element_type=jnp.float32) + b3_ref[...]       # (80, TILE_N)
    h = jnp.dot(w4_ref[...], jnp.tanh(h).astype(cdt),
                preferred_element_type=jnp.float32) + b4_ref[...]       # (40, TILE_N)
    h = jnp.tanh(h)                                                     # (40, TILE_N)

    # Output layer: (1,40)x(40,TILE_N) uses 1 MXU sublane -> VPU multiply +
    # sublane reduction instead (kept in f32 for accuracy).
    o = jnp.sum(h * w5_ref[...], axis=0, keepdims=True) + b5_ref[...]   # (1, TILE_N)
    o_ref[...] = o.astype(o_ref.dtype)


def _resident_spec(shape):
    # Full-array block with a constant index_map: stays VMEM-resident across the
    # batch grid (block_shape == array shape, so (8,128) tiling rules are waived).
    return pl.BlockSpec(shape, lambda i: (0, 0))


@functools.partial(jax.jit, static_argnames=("tile_n", "matmul_dtype"))
def net_forward(x, t, params, tile_n=DEFAULT_TILE_N, matmul_dtype=jnp.bfloat16):
    """x, t: (N, 1) float32. Returns (N, 1) float32.

    params: list of (W, b) with W stored (in, out) and b stored (1, out),
    matching y = u @ W + b (same math as PyTorch's Linear).
    """
    (w1, b1), (w2, b2), (w3, b3), (w4, b4), (w5, b5) = params

    # Transpose weights/biases for the batch-along-lanes layout.
    w1t = w1.T                                    # (80, 2)  f32 (VPU layer)
    w2t = w2.T.astype(matmul_dtype)               # (80, 80)
    w3t = w3.T.astype(matmul_dtype)               # (80, 80)
    w4t = w4.T.astype(matmul_dtype)               # (40, 80)
    w5c = w5                                      # (40, 1)  f32 (VPU reduction)
    b1c, b2c, b3c, b4c, b5c = b1.T, b2.T, b3.T, b4.T, b5.T   # (out, 1)

    lane = 128
    n = x.shape[0]

    # Tile selection: multiple of 128 lanes, no larger than needed, and at least
    # two grid tiles when there is enough work so the "parallel" batch axis can
    # shard across both v7x TensorCores (no-op on single-TC v5e/v6e).
    tile = _round_up(max(int(tile_n), lane), lane)
    tile = min(tile, _round_up(n, lane))
    if n > lane and _round_up(n, tile) // tile < 2:
        tile = _round_up(-(-n // 2), lane)
    n_pad = _round_up(n, tile)
    num_tiles = n_pad // tile

    # Single lane-dense input slab: row 0 = x, row 1 = t.
    u = jnp.concatenate([x.T, t.T], axis=0)       # (2, N)
    if n_pad != n:
        u = jnp.pad(u, ((0, 0), (0, n_pad - n)))

    weight_arrays = [w1t, b1c, w2t, b2c, w3t, b3c, w4t, b4c, w5c, b5c]
    weight_bytes = sum(int(a.size) * a.dtype.itemsize for a in weight_arrays)

    flops_per_point = 2 * (2 * 80 + 80 * 80 + 80 * 80 + 80 * 40 + 40 * 1)   # 32400
    trans_per_point = 80 + 80 + 80 + 40                                     # 280

    in_specs = (
        [pl.BlockSpec((2, tile), lambda i: (0, i))]          # (2, TILE_N) inputs
        + [_resident_spec(a.shape) for a in weight_arrays]   # VMEM-resident weights
    )

    out = pl.pallas_call(
        _mlp_kernel,
        out_shape=jax.ShapeDtypeStruct((1, n_pad), jnp.float32),
        grid=(num_tiles,),
        in_specs=in_specs,
        out_specs=pl.BlockSpec((1, tile), lambda i: (0, i)),  # lane-dense output
        compiler_params=pltpu.CompilerParams(
            dimension_semantics=("parallel",),
            vmem_limit_bytes=32 * 1024 * 1024,
        ),
        cost_estimate=pl.CostEstimate(
            flops=n_pad * flops_per_point,
            transcendentals=n_pad * trans_per_point,
            bytes_accessed=12 * n_pad + weight_bytes,
        ),
    )(u, *weight_arrays)

    return out[:, :n].T                            # (N, 1)


def init_params(key):
    """Deterministic init mimicking PyTorch nn.Linear defaults:
    U(-1/sqrt(fan_in), 1/sqrt(fan_in)) for both weight and bias.
    Weights are stored (in, out); biases as (1, out)."""
    dims = [(2, 80), (80, 80), (80, 80), (80, 40), (40, 1)]
    params = []
    for (fan_in, fan_out) in dims:
        key, kw, kb = jax.random.split(key, 3)
        bound = 1.0 / jnp.sqrt(jnp.float32(fan_in))
        w = jax.random.uniform(kw, (fan_in, fan_out), jnp.float32, -bound, bound)
        b = jax.random.uniform(kb, (1, fan_out), jnp.float32, -bound, bound)
        params.append((w, b))
    return params


def _reference_forward(x, t, params):
    u = jnp.concatenate([x, t], axis=1)
    (w1, b1), (w2, b2), (w3, b3), (w4, b4), (w5, b5) = params
    h = u @ w1 + b1
    h = jnp.tanh(h) @ w2 + b2
    h = jnp.tanh(h) @ w3 + b3
    h = jnp.tanh(h) @ w4 + b4
    return jnp.tanh(h) @ w5 + b5


if __name__ == "__main__":
    key = jax.random.PRNGKey(0)
    kp, kx, kt = jax.random.split(key, 3)

    params = init_params(kp)

    # Small single-tile case, full-f32 path (tight tolerance: checks structure).
    N = 8
    x = jax.random.uniform(kx, (N, 1), jnp.float32)
    t = jax.random.uniform(kt, (N, 1), jnp.float32)

    out = jax.block_until_ready(net_forward(x, t, params, matmul_dtype=jnp.float32))
    ref = _reference_forward(x, t, params)
    assert out.shape == (N, 1), out.shape
    assert jnp.allclose(out, ref, atol=1e-5, rtol=1e-5)

    # Multi-tile case with padding, default bf16-MXU/f32-accumulate path.
    N2 = 200
    kx2, kt2 = jax.random.split(kx)
    x2 = jax.random.uniform(kx2, (N2, 1), jnp.float32)
    t2 = jax.random.uniform(kt2, (N2, 1), jnp.float32)

    out2 = jax.block_until_ready(net_forward(x2, t2, params, tile_n=128))
    ref2 = _reference_forward(x2, t2, params)
    assert out2.shape == (N2, 1), out2.shape
    assert jnp.allclose(out2, ref2, atol=3e-2, rtol=3e-2)

    # Same multi-tile case in f32 to confirm the layout is exact.
    out3 = jax.block_until_ready(
        net_forward(x2, t2, params, tile_n=128, matmul_dtype=jnp.float32))
    assert jnp.allclose(out3, ref2, atol=1e-5, rtol=1e-5)

    print("KERNEL_OK")
</pallas_src>

<mosaic_0001>
module attributes {stable_mosaic.version = 11 : i64} {
  func.func @_mlp_kernel(%arg0: i32, %arg1: memref<2x128xf32, #tpu.memory_space<vmem>>, %arg2: memref<80x2xf32, #tpu.memory_space<vmem>>, %arg3: memref<80x1xf32, #tpu.memory_space<vmem>>, %arg4: memref<80x80xf32, #tpu.memory_space<vmem>>, %arg5: memref<80x1xf32, #tpu.memory_space<vmem>>, %arg6: memref<80x80xf32, #tpu.memory_space<vmem>>, %arg7: memref<80x1xf32, #tpu.memory_space<vmem>>, %arg8: memref<40x80xf32, #tpu.memory_space<vmem>>, %arg9: memref<40x1xf32, #tpu.memory_space<vmem>>, %arg10: memref<40x1xf32, #tpu.memory_space<vmem>>, %arg11: memref<1x1xf32, #tpu.memory_space<vmem>>, %arg12: memref<1x128xf32, #tpu.memory_space<vmem>>) attributes {dimension_semantics = [#tpu.dimension_semantics<parallel>], iteration_bounds = array<i64: 1>, scalar_prefetch = 0 : i64, scratch_operands = 0 : i64, tpu.core_type = #tpu.core_type<tc>, window_params = [{transform_indices = @transform_0, window_bounds = array<i64: 2, 128>}, {pipeline_mode = #tpu.pipeline_mode<synchronous>, transform_indices = @transform_1, window_bounds = array<i64: 80, 2>}, {pipeline_mode = #tpu.pipeline_mode<synchronous>, transform_indices = @transform_2, window_bounds = array<i64: 80, 1>}, {pipeline_mode = #tpu.pipeline_mode<synchronous>, transform_indices = @transform_3, window_bounds = array<i64: 80, 80>}, {pipeline_mode = #tpu.pipeline_mode<synchronous>, transform_indices = @transform_4, window_bounds = array<i64: 80, 1>}, {pipeline_mode = #tpu.pipeline_mode<synchronous>, transform_indices = @transform_5, window_bounds = array<i64: 80, 80>}, {pipeline_mode = #tpu.pipeline_mode<synchronous>, transform_indices = @transform_6, window_bounds = array<i64: 80, 1>}, {pipeline_mode = #tpu.pipeline_mode<synchronous>, transform_indices = @transform_7, window_bounds = array<i64: 40, 80>}, {pipeline_mode = #tpu.pipeline_mode<synchronous>, transform_indices = @transform_8, window_bounds = array<i64: 40, 1>}, {pipeline_mode = #tpu.pipeline_mode<synchronous>, transform_indices = @transform_9, window_bounds = array<i64: 40, 1>}, {pipeline_mode = #tpu.pipeline_mode<synchronous>, transform_indices = @transform_10, window_bounds = array<i64: 1, 1>}, {transform_indices = @transform_11, window_bounds = array<i64: 1, 128>}]} {
    %c0 = arith.constant 0 : index
    %c0_0 = arith.constant 0 : index
    %0 = vector.load %arg1[%c0, %c0_0] : memref<2x128xf32, #tpu.memory_space<vmem>>, vector<2x128xf32>
    %c0_1 = arith.constant 0 : index
    %c0_2 = arith.constant 0 : index
    %1 = vector.load %arg2[%c0_1, %c0_2] : memref<80x2xf32, #tpu.memory_space<vmem>>, vector<80x2xf32>
    %2 = vector.extract_strided_slice %1 {offsets = [0, 0], sizes = [80, 1], strides = [1, 1]} : vector<80x2xf32> to vector<80x1xf32>
    %3 = vector.extract_strided_slice %0 {offsets = [0, 0], sizes = [1, 128], strides = [1, 1]} : vector<2x128xf32> to vector<1x128xf32>
    %4 = vector.broadcast %2 : vector<80x1xf32> to vector<80x128xf32>
    %5 = vector.broadcast %3 : vector<1x128xf32> to vector<80x128xf32>
    %6 = arith.mulf %4, %5 : vector<80x128xf32>
    %7 = vector.extract_strided_slice %1 {offsets = [0, 1], sizes = [80, 1], strides = [1, 1]} : vector<80x2xf32> to vector<80x1xf32>
    %8 = vector.extract_strided_slice %0 {offsets = [1, 0], sizes = [1, 128], strides = [1, 1]} : vector<2x128xf32> to vector<1x128xf32>
    %9 = vector.broadcast %7 : vector<80x1xf32> to vector<80x128xf32>
    %10 = vector.broadcast %8 : vector<1x128xf32> to vector<80x128xf32>
    %11 = arith.mulf %9, %10 : vector<80x128xf32>
    %12 = arith.addf %6, %11 : vector<80x128xf32>
    %c0_3 = arith.constant 0 : index
    %c0_4 = arith.constant 0 : index
    %13 = vector.load %arg3[%c0_3, %c0_4] : memref<80x1xf32, #tpu.memory_space<vmem>>, vector<80x1xf32>
    %14 = vector.broadcast %13 : vector<80x1xf32> to vector<80x128xf32>
    %15 = arith.addf %12, %14 : vector<80x128xf32>
    %c0_5 = arith.constant 0 : index
    %c0_6 = arith.constant 0 : index
    %16 = vector.load %arg4[%c0_5, %c0_6] : memref<80x80xf32, #tpu.memory_space<vmem>>, vector<80x80xf32>
    %17 = math.tanh %15 : vector<80x128xf32>
    %cst = arith.constant dense<0.000000e+00> : vector<80x128xf32>
    %18 = tpu.matmul %16, %17, %cst {dimension_numbers = #tpu.dot_dimension_numbers<[1], [0], [0], [1], [0, 0, 1, 1], [], []>} : vector<80x80xf32>, vector<80x128xf32>, vector<80x128xf32> -> vector<80x128xf32>
    %c0_7 = arith.constant 0 : index
    %c0_8 = arith.constant 0 : index
    %19 = vector.load %arg5[%c0_7, %c0_8] : memref<80x1xf32, #tpu.memory_space<vmem>>, vector<80x1xf32>
    %20 = vector.broadcast %19 : vector<80x1xf32> to vector<80x128xf32>
    %21 = arith.addf %18, %20 : vector<80x128xf32>
    %c0_9 = arith.constant 0 : index
    %c0_10 = arith.constant 0 : index
    %22 = vector.load %arg6[%c0_9, %c0_10] : memref<80x80xf32, #tpu.memory_space<vmem>>, vector<80x80xf32>
    %23 = math.tanh %21 : vector<80x128xf32>
    %cst_11 = arith.constant dense<0.000000e+00> : vector<80x128xf32>
    %24 = tpu.matmul %22, %23, %cst_11 {dimension_numbers = #tpu.dot_dimension_numbers<[1], [0], [0], [1], [0, 0, 1, 1], [], []>} : vector<80x80xf32>, vector<80x128xf32>, vector<80x128xf32> -> vector<80x128xf32>
    %c0_12 = arith.constant 0 : index
    %c0_13 = arith.constant 0 : index
    %25 = vector.load %arg7[%c0_12, %c0_13] : memref<80x1xf32, #tpu.memory_space<vmem>>, vector<80x1xf32>
    %26 = vector.broadcast %25 : vector<80x1xf32> to vector<80x128xf32>
    %27 = arith.addf %24, %26 : vector<80x128xf32>
    %c0_14 = arith.constant 0 : index
    %c0_15 = arith.constant 0 : index
    %28 = vector.load %arg8[%c0_14, %c0_15] : memref<40x80xf32, #tpu.memory_space<vmem>>, vector<40x80xf32>
    %29 = math.tanh %27 : vector<80x128xf32>
    %cst_16 = arith.constant dense<0.000000e+00> : vector<40x128xf32>
    %30 = tpu.matmul %28, %29, %cst_16 {dimension_numbers = #tpu.dot_dimension_numbers<[1], [0], [0], [1], [0, 0, 1, 1], [], []>} : vector<40x80xf32>, vector<80x128xf32>, vector<40x128xf32> -> vector<40x128xf32>
    %c0_17 = arith.constant 0 : index
    %c0_18 = arith.constant 0 : index
    %31 = vector.load %arg9[%c0_17, %c0_18] : memref<40x1xf32, #tpu.memory_space<vmem>>, vector<40x1xf32>
    %32 = vector.broadcast %31 : vector<40x1xf32> to vector<40x128xf32>
    %33 = arith.addf %30, %32 : vector<40x128xf32>
    %34 = math.tanh %33 : vector<40x128xf32>
    %c0_19 = arith.constant 0 : index
    %c0_20 = arith.constant 0 : index
    %35 = vector.load %arg10[%c0_19, %c0_20] : memref<40x1xf32, #tpu.memory_space<vmem>>, vector<40x1xf32>
    %36 = vector.broadcast %35 : vector<40x1xf32> to vector<40x128xf32>
    %37 = arith.mulf %34, %36 : vector<40x128xf32>
    %cst_21 = arith.constant dense<0.000000e+00> : vector<128xf32>
    %38 = vector.multi_reduction <add>, %37, %cst_21 [0] : vector<40x128xf32> to vector<128xf32>
    %39 = vector.shape_cast %38 : vector<128xf32> to vector<1x128xf32>
    %c0_22 = arith.constant 0 : index
    %c0_23 = arith.constant 0 : index
    %40 = vector.load %arg11[%c0_22, %c0_23] : memref<1x1xf32, #tpu.memory_space<vmem>>, vector<1x1xf32>
    %41 = vector.broadcast %40 : vector<1x1xf32> to vector<1x128xf32>
    %42 = arith.addf %39, %41 : vector<1x128xf32>
    %c0_24 = arith.constant 0 : index
    %c0_25 = arith.constant 0 : index
    %43 = vector.load %arg12[%c0_24, %c0_25] : memref<1x128xf32, #tpu.memory_space<vmem>>, vector<1x128xf32>
    tpu.vector_store %arg12[%c0_24, %c0_25], %42 {strides = array<i32>} : memref<1x128xf32, #tpu.memory_space<vmem>>, vector<1x128xf32>,
    return
  }
  func.func @transform_0(%arg0: i32) -> (i32, i32) {
    %c0_i32 = arith.constant 0 : i32
    %c0_i32_0 = arith.constant 0 : i32
    return %c0_i32, %arg0 : i32, i32
  }
  func.func @transform_1(%arg0: i32) -> (i32, i32) {
    %c0_i32 = arith.constant 0 : i32
    %c0_i32_0 = arith.constant 0 : i32
    %c0_i32_1 = arith.constant 0 : i32
    return %c0_i32, %c0_i32_0 : i32, i32
  }
  func.func @transform_2(%arg0: i32) -> (i32, i32) {
    %c0_i32 = arith.constant 0 : i32
    %c0_i32_0 = arith.constant 0 : i32
    %c0_i32_1 = arith.constant 0 : i32
    return %c0_i32, %c0_i32_0 : i32, i32
  }
  func.func @transform_3(%arg0: i32) -> (i32, i32) {
    %c0_i32 = arith.constant 0 : i32
    %c0_i32_0 = arith.constant 0 : i32
    %c0_i32_1 = arith.constant 0 : i32
    return %c0_i32, %c0_i32_0 : i32, i32
  }
  func.func @transform_4(%arg0: i32) -> (i32, i32) {
    %c0_i32 = arith.constant 0 : i32
    %c0_i32_0 = arith.constant 0 : i32
    %c0_i32_1 = arith.constant 0 : i32
    return %c0_i32, %c0_i32_0 : i32, i32
  }
  func.func @transform_5(%arg0: i32) -> (i32, i32) {
    %c0_i32 = arith.constant 0 : i32
    %c0_i32_0 = arith.constant 0 : i32
    %c0_i32_1 = arith.constant 0 : i32
    return %c0_i32, %c0_i32_0 : i32, i32
  }
  func.func @transform_6(%arg0: i32) -> (i32, i32) {
    %c0_i32 = arith.constant 0 : i32
    %c0_i32_0 = arith.constant 0 : i32
    %c0_i32_1 = arith.constant 0 : i32
    return %c0_i32, %c0_i32_0 : i32, i32
  }
  func.func @transform_7(%arg0: i32) -> (i32, i32) {
    %c0_i32 = arith.constant 0 : i32
    %c0_i32_0 = arith.constant 0 : i32
    %c0_i32_1 = arith.constant 0 : i32
    return %c0_i32, %c0_i32_0 : i32, i32
  }
  func.func @transform_8(%arg0: i32) -> (i32, i32) {
    %c0_i32 = arith.constant 0 : i32
    %c0_i32_0 = arith.constant 0 : i32
    %c0_i32_1 = arith.constant 0 : i32
    return %c0_i32, %c0_i32_0 : i32, i32
  }
  func.func @transform_9(%arg0: i32) -> (i32, i32) {
    %c0_i32 = arith.constant 0 : i32
    %c0_i32_0 = arith.constant 0 : i32
    %c0_i32_1 = arith.constant 0 : i32
    return %c0_i32, %c0_i32_0 : i32, i32
  }
  func.func @transform_10(%arg0: i32) -> (i32, i32) {
    %c0_i32 = arith.constant 0 : i32
    %c0_i32_0 = arith.constant 0 : i32
    %c0_i32_1 = arith.constant 0 : i32
    return %c0_i32, %c0_i32_0 : i32, i32
  }
  func.func @transform_11(%arg0: i32) -> (i32, i32) {
    %c0_i32 = arith.constant 0 : i32
    %c0_i32_0 = arith.constant 0 : i32
    return %c0_i32, %arg0 : i32, i32
  }
}

</mosaic_0001>

<bundles_post_ra>
// kernel: net_forward.1
= control target key start
LH: loop header
LB: loop body
LE: loop exit
PB: predicated region body
PF: predicated region fallthrough
CT: control target
= control target key end

     0   :  { %v1253_v0 = vmov 1   ;;  %v1254_v8 = vmov 0   ;;  %vm329_vm0 = vcmask 654336   ;;  %v101_v57 = vlaneseq  ;;  %s1641_s1 = inlined_call_operand.vmem [shape: f32[80,2], index: 1, kind: input, shape index: {}]   ;;  %s1642_s10 = inlined_call_operand.<no memory space> [shape: f32[1,1], index: 10, kind: input, shape index: {}]   ;;  %s1643_s2 = inlined_call_operand.vmem [shape: f32[80,1], index: 2, kind: input, shape index: {}]   ;;  %s1644_s4 = inlined_call_operand.vmem [shape: f32[80,1], index: 4, kind: input, shape index: {}]   ;;  %s1645_s6 = inlined_call_operand.vmem [shape: f32[80,1], index: 6, kind: input, shape index: {}]   ;;  %s1646_s8 = inlined_call_operand.vmem [shape: f32[40,1], index: 8, kind: input, shape index: {}]   ;;  %s1647_s9 = inlined_call_operand.vmem [shape: f32[40,1], index: 9, kind: input, shape index: {}]   ;;  %s1648_s3 = inlined_call_operand.vmem [shape: f32[80,80], index: 3, kind: input, shape index: {}]   ;;  %s1649_s0 = inlined_call_operand.vmem [shape: f32[2,128], index: 0, kind: input, shape index: {}]   ;;  %s1650_s5 = inlined_call_operand.vmem [shape: f32[80,80], index: 5, kind: input, shape index: {}]   ;;  %s1651_s7 = inlined_call_operand.vmem [shape: f32[40,80], index: 7, kind: input, shape index: {}]   ;;  %s1652_s11 = inlined_call_operand.vmem [shape: f32[1,128], index: 11, kind: output, shape index: {}]  }
   0x1   :  { %1173 = vset.pattern.permute.xlu0 %v1253_v0  ;;  %1171 = vset.pattern.permute.xlu1 %v1253_v0  ;;  %v43_v1 = vld [vmem:[%s1641_s1 + $0x10] sm:$0xff]  ;;  %v41_v2 = vld [vmem:[%s1641_s1] sm:$0xff]  ;;  %v16_v3 = vstv %s1642_s10  ;;  %v42_v5 = vld [vmem:[%s1641_s1 + $0x8] sm:$0xff]  ;;  %vm1256_vm1 = vmmov 0  }
   0x2   :  { %124 = vperm.xlu0 %1173, %v43_v1   ;;  %116 = vperm.xlu1 %1171, %v41_v2   ;;  %17 = vst [vmem:[#allocation2] sm:$0x1] %v16_v3  ;;  %v45_v4 = vld [vmem:[%s1641_s1 + $0x20] sm:$0xff]  ;;  %v47_v6 = vld [vmem:[%s1641_s1 + $0x30] sm:$0xff]  ;;  %v44_v7 = vld [vmem:[%s1641_s1 + $0x18] sm:$0xff]  ;;  %v1480_v60 = vshrl.u32 %v101_v57, 7 }
   0x3   :  { %v49_v9 = vld [vmem:[%s1641_s1 + $0x40] sm:$0xff]  ;;  %v46_v11 = vld [vmem:[%s1641_s1 + $0x28] sm:$0xff]  ;;  %v182_v13 = vld [vmem:[%s1643_s2 + $0x18] sm:$0xff] }
   0x4   :  { %v179_v10 = vld [vmem:[%s1643_s2] sm:$0xff]  ;;  %v180_v12 = vld [vmem:[%s1643_s2 + $0x8] sm:$0xff]  ;;  %v181_v15 = vld [vmem:[%s1643_s2 + $0x10] sm:$0xff] }
   0x5   :  { %v184_v14 = vld [vmem:[%s1643_s2 + $0x28] sm:$0xff]  ;;  %v186_v16 = vld [vmem:[%s1643_s2 + $0x38] sm:$0xff]  ;;  %v269_v17 = vld [vmem:[%s1644_s4] sm:$0xff] }
   0x6   :  { %132 = vperm.xlu0 %1173, %v45_v4   ;;  %120 = vperm.xlu1 %1171, %v42_v5   ;;  %v48_v18 = vld [vmem:[%s1641_s1 + $0x38] sm:$0xff]  ;;  %v271_v19 = vld [vmem:[%s1644_s4 + $0x10] sm:$0xff]  ;;  %v273_v20 = vld [vmem:[%s1644_s4 + $0x20] sm:$0xff] }
   0x7   :  { %v183_v21 = vld [vmem:[%s1643_s2 + $0x20] sm:$0xff]  ;;  %v275_v22 = vld [vmem:[%s1644_s4 + $0x30] sm:$0xff]  ;;  %v50_v24 = vld [vmem:[%s1641_s1 + $0x48] sm:$0xff] }
   0x8   :  { %v277_v23 = vld [vmem:[%s1644_s4 + $0x40] sm:$0xff]  ;;  %v497_v26 = vld [vmem:[%s1645_s6 + $0x10] sm:$0xff]  ;;  %v188_v32 = vld [vmem:[%s1643_s2 + $0x48] sm:$0xff] }
   0x9   :  { %v495_v25 = vld [vmem:[%s1645_s6] sm:$0xff]  ;;  %v185_v28 = vld [vmem:[%s1643_s2 + $0x30] sm:$0xff]  ;;  %v270_v34 = vld [vmem:[%s1644_s4 + $0x8] sm:$0xff] }
   0xa   :  { %140 = vperm.xlu0 %1173, %v47_v6   ;;  %1172 = vset.pattern.permute.xlu1 %v1254_v8  ;;  %v499_v27 = vld [vmem:[%s1645_s6 + $0x20] sm:$0xff]  ;;  %v501_v29 = vld [vmem:[%s1645_s6 + $0x30] sm:$0xff]  ;;  %v272_v36 = vld [vmem:[%s1644_s4 + $0x18] sm:$0xff] }
   0xb   :  { %68 = vperm.xlu1 %1172, %v44_v7   ;;  %v187_v30 = vld [vmem:[%s1643_s2 + $0x40] sm:$0xff]  ;;  %v717_v35 = vld [vmem:[%s1646_s8 + $0x10] sm:$0xff]  ;;  %v274_v38 = vld [vmem:[%s1644_s4 + $0x28] sm:$0xff] }
   0xc   :  { %v503_v31 = vld [vmem:[%s1645_s6 + $0x40] sm:$0xff]  ;;  %v856_v39 = vld [vmem:[%s1647_s9 + $0x8] sm:$0xff]  ;;  %v276_v40 = vld [vmem:[%s1644_s4 + $0x38] sm:$0xff] }
   0xd   :  { %v715_v33 = vld [vmem:[%s1646_s8] sm:$0xff]  ;;  %v858_v41 = vld [vmem:[%s1647_s9 + $0x18] sm:$0xff]  ;;  %v278_v42 = vld [vmem:[%s1644_s4 + $0x48] sm:$0xff] }
   0xe   :  { %148 = vperm.xlu0 %1173, %v49_v9   ;;  %v719_v37 = vld [vmem:[%s1646_s8 + $0x20] sm:$0xff]  ;;  %v496_v45 = vld [vmem:[%s1645_s6 + $0x8] sm:$0xff]  ;;  %v498_v46 = vld [vmem:[%s1645_s6 + $0x18] sm:$0xff] }
   0xf   :  { %1174 = vset.pattern.permute.xlu1 %v1253_v0  ;;  %v249_v43 = vld [vmem:[%s1648_s3] sm:$0xff]  ;;  %v500_v47 = vld [vmem:[%s1645_s6 + $0x28] sm:$0xff]  ;;  %v502_v48 = vld [vmem:[%s1645_s6 + $0x38] sm:$0xff] }
  0x10   :  { %128 = vperm.xlu1 %1174, %v44_v7   ;;  %1016 = vmatprep.mubr.msk.f32.mxu0 %vm329_vm0, %v249_v43  ;;  %v900_v44 = vld [vmem:[#allocation2] sm:$0x1]  ;;  %v504_v49 = vld [vmem:[%s1645_s6 + $0x48] sm:$0xff]  ;;  %v718_v51 = vld [vmem:[%s1646_s8 + $0x18] sm:$0xff] }
  0x11   :  { %v716_v50 = vld [vmem:[%s1646_s8 + $0x8] sm:$0xff]  ;;  %v855_v54 = vld [vmem:[%s1647_s9] sm:$0xff]  ;;  %v857_v58 = vld [vmem:[%s1647_s9 + $0x10] sm:$0xff] }
  0x12   :  { %1180 = vset.pattern.permute.xlu0 %v1254_v8  ;;  %v859_v62 = vld [vmem:[%s1647_s9 + $0x20] sm:$0xff] }
  0x13   :  { %53 = vperm.xlu0 %1180, %v41_v2   ;;  %v40_v2 = vld [vmem:[%s1649_s0] sm:$0x3] }
  0x14   :  { %1175 = vset.pattern.permute.xlu1 %v1254_v8 }
  0x15   :  { %191 = vperm.xlu1 %1175, %v179_v10  }
  0x17   :  { %58 = vperm.xlu0 %1180, %v42_v5  }
  0x19   :  { %73 = vperm.xlu1 %1175, %v45_v4  }
  0x1b   :  { %63 = vperm.xlu0 %1180, %v43_v1   ;;  %v103_v1 = vsub.s32 0, %v1480_v60 }
  0x1d   :  { %78 = vperm.xlu1 %1175, %v46_v11   ;;  %v1496_v5 = vrot.slane %v40_v2, %v103_v1 }
  0x1f   :  { %196 = vperm.xlu0 %1180, %v180_v12  }
  0x21   :  { %1176 = vset.pattern.permute.xlu1 %v1253_v0 }
  0x22   :  { %136 = vperm.xlu1 %1176, %v46_v11  }
  0x23   :  { %206 = vperm.xlu0 %1180, %v182_v13  }
  0x26   :  { %1177 = vset.pattern.permute.xlu1 %v1254_v8 }
  0x27   :  { %216 = vperm.xlu0 %1180, %v184_v14   ;;  %201 = vperm.xlu1 %1177, %v181_v15  }
  0x2b   :  { %226 = vperm.xlu0 %1180, %v186_v16   ;;  %83 = vperm.xlu1 %1177, %v47_v6  }
  0x2f   :  { %281 = vperm.xlu0 %1180, %v269_v17   ;;  %88 = vperm.xlu1 %1177, %v48_v18  }
  0x33   :  { %291 = vperm.xlu0 %1180, %v271_v19   ;;  %1178 = vset.pattern.permute.xlu1 %v1253_v0 }
  0x34   :  { %144 = vperm.xlu1 %1178, %v48_v18  }
  0x37   :  { %301 = vperm.xlu0 %1180, %v273_v20  }
  0x38   :  { %1179 = vset.pattern.permute.xlu1 %v1254_v8 }
  0x39   :  { %211 = vperm.xlu1 %1179, %v183_v21  }
  0x3b   :  { %311 = vperm.xlu0 %1180, %v275_v22  }
  0x3d   :  { %93 = vperm.xlu1 %1179, %v49_v9  }
  0x3f   :  { %321 = vperm.xlu0 %1180, %v277_v23  }
  0x41   :  { %98 = vperm.xlu1 %1179, %v50_v24  }
  0x43   :  { %507 = vperm.xlu0 %1180, %v495_v25  }
  0x45   :  { %1181 = vset.pattern.permute.xlu1 %v1253_v0  ;;  %v157_v0 = vsub.s32 1, %v1480_v60 }
  0x46   :  { %152 = vperm.xlu1 %1181, %v50_v24  }
  0x47   :  { %517 = vperm.xlu0 %1180, %v497_v26   ;;  %v1492_v4 = vrot.slane %v40_v2, %v157_v0 }
  0x4a   :  { %1182 = vset.pattern.permute.xlu1 %v1254_v8 }
  0x4b   :  { %527 = vperm.xlu0 %1180, %v499_v27   ;;  %221 = vperm.xlu1 %1182, %v185_v28  }
  0x4f   :  { %537 = vperm.xlu0 %1180, %v501_v29   ;;  %231 = vperm.xlu1 %1182, %v187_v30  }
  0x53   :  { %547 = vperm.xlu0 %1180, %v503_v31   ;;  %236 = vperm.xlu1 %1182, %v188_v32  }
  0x57   :  { %722 = vperm.xlu0 %1180, %v715_v33   ;;  %286 = vperm.xlu1 %1182, %v270_v34  }
  0x5b   :  { %732 = vperm.xlu0 %1180, %v717_v35   ;;  %296 = vperm.xlu1 %1182, %v272_v36  }
  0x5f   :  { %742 = vperm.xlu0 %1180, %v719_v37   ;;  %306 = vperm.xlu1 %1182, %v274_v38  }
  0x63   :  { %867 = vperm.xlu0 %1180, %v856_v39   ;;  %316 = vperm.xlu1 %1182, %v276_v40  }
  0x67   :  { %877 = vperm.xlu0 %1180, %v858_v41   ;;  %326 = vperm.xlu1 %1182, %v278_v42  }
  0x6b   :  { %903 = vperm.xlu0 %1180, %v900_v44   ;;  %512 = vperm.xlu1 %1182, %v496_v45  }
  0x6f   :  { %522 = vperm.xlu1 %1182, %v498_v46  }
  0x73   :  { %532 = vperm.xlu1 %1182, %v500_v47  }
  0x77   :  { %542 = vperm.xlu1 %1182, %v502_v48  }
  0x7b   :  { %552 = vperm.xlu1 %1182, %v504_v49  }
  0x7f   :  { %727 = vperm.xlu1 %1182, %v716_v50  }
  0x81   :  { %v117_v52 = vpop.permute.xlu1 %116  ;;  %v125_v53 = vpop.permute.xlu0 %124 }
  0x82   :  { %v159_v9 = vmul.f32 %v1492_v4, %v117_v52  ;;  %v161_v20 = vmul.f32 %v1492_v4, %v125_v53 }
  0x83   :  { %737 = vperm.xlu1 %1182, %v718_v51  }
  0x85   :  { %v121_v55 = vpop.permute.xlu1 %120  ;;  %v133_v56 = vpop.permute.xlu0 %132 }
  0x86   :  { %v160_v15 = vmul.f32 %v1492_v4, %v121_v55  ;;  %v163_v41 = vmul.f32 %v1492_v4, %v133_v56 }
  0x87   :  { %862 = vperm.xlu1 %1182, %v855_v54  }
  0x89   :  { %v1478_v59 = vpop.permute.xlu0 %140 }
  0x8a   :  { %v69_v61 = vpop.permute.xlu1 %68  ;;  %v165_v0 = vmul.f32 %v1492_v4, %v1478_v59 }
  0x8b   :  { %872 = vperm.xlu1 %1182, %v857_v58   ;;  %v108_v24 = vmul.f32 %v1496_v5, %v69_v61 }
  0x8d   :  { %v1485_v63 = vpop.permute.xlu0 %148 }
  0x8f   :  { %882 = vperm.xlu1 %1182, %v859_v62   ;;  %v129_v3 = vpop.permute.xlu1 %128 }
  0x90   :  { %v162_v21 = vmul.f32 %v1492_v4, %v129_v3 }
  0x92   :  { %v54_v6 = vpop.permute.xlu0 %53  ;;  %v172_v27 = vadd.f32 %v162_v21, %v108_v24  ;;  %v253_v24 = vld [vmem:[%s1648_s3 + $0x20] sm:$0xff] }
  0x93   :  { %v105_v7 = vmul.f32 %v1496_v5, %v54_v6 }
  0x94   :  { %v192_v8 = vpop.permute.xlu1 %191 }
  0x95   :  { %v169_v11 = vadd.f32 %v159_v9, %v105_v7 }
  0x96   :  { %v59_v10 = vpop.permute.xlu0 %58 }
  0x97   :  { %v106_v13 = vmul.f32 %v1496_v5, %v59_v10  ;;  %v239_v16 = vadd.f32 %v192_v8, %v169_v11  ;;  %v167_v10 = vmul.f32 %v1492_v4, %v1485_v63 }
  0x98   :  { %v74_v12 = vpop.permute.xlu1 %73 }
  0x99   :  { %v170_v18 = vadd.f32 %v160_v15, %v106_v13  ;;  %1183 = vtanh.f32 %v239_v16  ;;  %v109_v42 = vmul.f32 %v1496_v5, %v74_v12 }
  0x9a   :  { %v64_v14 = vpop.permute.xlu0 %63 }
  0x9b   :  { %v107_v22 = vmul.f32 %v1496_v5, %v64_v14  ;;  %v173_v48 = vadd.f32 %v163_v41, %v109_v42 }
  0x9c   :  { %v79_v17 = vpop.permute.xlu1 %78 }
  0x9d   :  { %v171_v28 = vadd.f32 %v161_v20, %v107_v22  ;;  %v110_v38 = vmul.f32 %v1496_v5, %v79_v17 }
  0x9e   :  { %v197_v19 = vpop.permute.xlu0 %196 }
  0x9f   :  { %v240_v23 = vadd.f32 %v197_v19, %v170_v18 }
  0xa1   :  { %1185 = vtanh.f32 %v240_v23  ;;  %v137_v25 = vpop.permute.xlu1 %136  ;;  %v252_v23 = vld [vmem:[%s1648_s3 + $0x18] sm:$0xff] }
  0xa2   :  { %v207_v26 = vpop.permute.xlu0 %206  ;;  %v164_v36 = vmul.f32 %v1492_v4, %v137_v25  ;;  %v254_v25 = vld [vmem:[%s1648_s3 + $0x28] sm:$0xff] }
  0xa3   :  { %v242_v29 = vadd.f32 %v207_v26, %v172_v27  ;;  %v1184_v32 = vpop.eup %1183  ;;  %v255_v26 = vld [vmem:[%s1648_s3 + $0x30] sm:$0xff]  ;;  %v256_v27 = vld [vmem:[%s1648_s3 + $0x38] sm:$0xff] }
  0xa4   :  { %v174_v39 = vadd.f32 %v164_v36, %v110_v38 }
  0xa5   :  { %1187 = vtanh.f32 %v242_v29  ;;  %v258_v29 = vld [vmem:[%s1648_s3 + $0x48] sm:$0xff] }
  0xa6   :  { %v202_v30 = vpop.permute.xlu1 %201  ;;  %v217_v43 = vpop.permute.xlu0 %216 }
  0xa7   :  { %v241_v31 = vadd.f32 %v202_v30, %v171_v28  ;;  %v244_v47 = vadd.f32 %v217_v43, %v174_v39  ;;  %v257_v28 = vld [vmem:[%s1648_s3 + $0x40] sm:$0xff] }
  0xa8   :  { %v475_v30 = vld [vmem:[%s1650_s5] sm:$0xff] }
  0xa9   :  { %1189 = vtanh.f32 %v241_v31  ;;  %1051 = vmatprep.mubr.msk.f32.mxu1 %vm329_vm0, %v475_v30 }
  0xaa   :  { %v84_v33 = vpop.permute.xlu1 %83  ;;  %1191 = vtanh.f32 %v244_v47  ;;  %v227_v2 = vpop.permute.xlu0 %226 }
  0xab   :  { %v1186_v34 = vpop.eup %1185  ;;  %v111_v58 = vmul.f32 %v1496_v5, %v84_v33 }
  0xac   :  { %v1101_v35 = vpack.c.bf16 %v1186_v34, %v1184_v32 }
  0xad   :  { %v175_v6 = vadd.f32 %v165_v0, %v111_v58 }
  0xae   :  { %v89_v37 = vpop.permute.xlu1 %88  ;;  %1102 = vmatprep.subr.bf16.mxu0 %v1101_v35  ;;  %v282_v32 = vpop.permute.xlu0 %281 }
  0xaf   :  { %1104 = vmatpush3.bf16.msra.mxu0 %v1101_v35  ;;  %v1188_v40 = vpop.eup %1187  ;;  %v112_v54 = vmul.f32 %v1496_v5, %v89_v37 }
  0xb2   :  { %v292_v34 = vpop.permute.xlu0 %291 }
  0xb3   :  { %v145_v44 = vpop.permute.xlu1 %144  ;;  %v1190_v45 = vpop.eup %1189 }
  0xb4   :  { %v1105_v46 = vpack.c.bf16 %v1188_v40, %v1190_v45  ;;  %v166_v52 = vmul.f32 %v1492_v4, %v145_v44  ;;  %v1192_v55 = vpop.eup %1191 }
  0xb6   :  { %1106 = vmatprep.subr.bf16.mxu0 %v1105_v46  ;;  %v176_v56 = vadd.f32 %v166_v52, %v112_v54  ;;  %v302_v41 = vpop.permute.xlu0 %301 }
  0xb7   :  { %1108 = vmatpush3.bf16.msra.mxu0 %v1105_v46 }
  0xb8   :  { %v212_v49 = vpop.permute.xlu1 %211  ;;  %v246_v3 = vadd.f32 %v227_v2, %v176_v56 }
  0xb9   :  { %v243_v50 = vadd.f32 %v212_v49, %v173_v48 }
  0xbb   :  { %1193 = vtanh.f32 %v243_v50  ;;  %v312_v50 = vpop.permute.xlu0 %311 }
  0xbc   :  { %v94_v51 = vpop.permute.xlu1 %93  ;;  %1195 = vtanh.f32 %v246_v3 }
  0xbd   :  { %v113_v7 = vmul.f32 %v1496_v5, %v94_v51 }
  0xbf   :  { %v177_v13 = vadd.f32 %v167_v10, %v113_v7  ;;  %v322_v0 = vpop.permute.xlu0 %321 }
  0xc0   :  { %v99_v53 = vpop.permute.xlu1 %98 }
  0xc1   :  { %v114_v59 = vmul.f32 %v1496_v5, %v99_v53  ;;  %v251_v5 = vld [vmem:[%s1648_s3 + $0x10] sm:$0xff] }
  0xc5   :  { %v1194_v57 = vpop.eup %1193  ;;  %v153_v61 = vpop.permute.xlu1 %152 }
  0xc6   :  { %v1109_v62 = vpack.c.bf16 %v1192_v55, %v1194_v57  ;;  %v168_v11 = vmul.f32 %v1492_v4, %v153_v61  ;;  %v1196_v18 = vpop.eup %1195  ;;  %v250_v4 = vld [vmem:[%s1648_s3 + $0x8] sm:$0xff] }
  0xc8   :  { %1110 = vmatprep.subr.bf16.mxu0 %v1109_v62  ;;  %v178_v15 = vadd.f32 %v168_v11, %v114_v59 }
  0xc9   :  { %1112 = vmatpush3.bf16.msra.mxu0 %v1109_v62 }
  0xca   :  { %v222_v8 = vpop.permute.xlu1 %221 }
  0xcb   :  { %v245_v9 = vadd.f32 %v222_v8, %v175_v6 }
  0xcd   :  { %1197 = vtanh.f32 %v245_v9 }
  0xce   :  { %v232_v12 = vpop.permute.xlu1 %231 }
  0xcf   :  { %v247_v14 = vadd.f32 %v232_v12, %v177_v13 }
  0xd1   :  { %1199 = vtanh.f32 %v247_v14 }
  0xd2   :  { %v237_v16 = vpop.permute.xlu1 %236 }
  0xd3   :  { %v248_v17 = vadd.f32 %v237_v16, %v178_v15 }
  0xd5   :  { %1201 = vtanh.f32 %v248_v17  ;;  %v476_v17 = vld [vmem:[%s1650_s5 + $0x8] sm:$0xff] }
  0xd6   :  { %v287_v31 = vpop.permute.xlu1 %286 }
  0xd7   :  { %v1198_v19 = vpop.eup %1197 }
  0xd8   :  { %v1113_v20 = vpack.c.bf16 %v1196_v18, %v1198_v19  ;;  %v477_v18 = vld [vmem:[%s1650_s5 + $0x10] sm:$0xff]  ;;  %v478_v19 = vld [vmem:[%s1650_s5 + $0x18] sm:$0xff] }
  0xda   :  { %1114 = vmatprep.subr.bf16.mxu0 %v1113_v20  ;;  %v297_v33 = vpop.permute.xlu1 %296 }
  0xdb   :  { %1116 = vmatpush3.bf16.msra.mxu0 %v1113_v20  ;;  %v1200_v63 = vpop.eup %1199  ;;  %v479_v20 = vld [vmem:[%s1650_s5 + $0x20] sm:$0xff] }
  0xde   :  { %v307_v39 = vpop.permute.xlu1 %306 }
  0xdf   :  { %v1202_v21 = vpop.eup %1201 }
  0xe0   :  { %v1117_v22 = vpack.c.bf16 %v1202_v21, %v1200_v63  ;;  %v480_v63 = vld [vmem:[%s1650_s5 + $0x28] sm:$0xff]  ;;  %v481_v21 = vld [vmem:[%s1650_s5 + $0x30] sm:$0xff] }
  0xe2   :  { %1118 = vmatprep.subr.bf16.mxu0 %v1117_v22  ;;  %v317_v48 = vpop.permute.xlu1 %316 }
  0xe3   :  { %1120 = vmatpush3.bf16.msra.mxu0 %v1117_v22  ;;  %v482_v22 = vld [vmem:[%s1650_s5 + $0x38] sm:$0xff] }
  0xe6   :  { %1017 = vmatmul.mubr.msk.f32.vlgmr.msra.gmra.mrb[0].mxu0 %vm329_vm0, %v250_v4  ;;  %v327_v58 = vpop.permute.xlu1 %326  ;;  %v483_v4 = vld [vmem:[%s1650_s5 + $0x40] sm:$0xff] }
  0xe7   :  { %1019 = vmatprep.mubr.msk.f32.mxu0 %vm329_vm0, %v251_v5  ;;  %v484_v5 = vld [vmem:[%s1650_s5 + $0x48] sm:$0xff] }
  0xea   :  { %1020 = vmatmul.mubr.msk.f32.gmra.mrb[2].mxu0 %vm329_vm0, %v252_v23  ;;  %v1255_v23 = vmov 0.0|0.0  }
  0xeb   :  { %1022 = vmatprep.mubr.msk.f32.mxu0 %vm329_vm0, %v253_v24  ;;  %1141 = vmatprep.subr.bf16.mxu0 %v1255_v23  ;;  %v1257_v24 = vmov 0.0  }
  0xee   :  { %1023 = vmatmul.mubr.msk.f32.gmra.mrb[4].mxu0 %vm329_vm0, %v254_v25  ;;  %v513_v25 = vpop.permute.xlu1 %512 }
  0xef   :  { %1025 = vmatprep.mubr.msk.f32.mxu0 %vm329_vm0, %v255_v26  ;;  %v508_v26 = vpop.permute.xlu0 %507 }
  0xf2   :  { %1026 = vmatmul.mubr.msk.f32.gmra.mrb[6].mxu0 %vm329_vm0, %v256_v27  ;;  %v523_v27 = vpop.permute.xlu1 %522 }
  0xf3   :  { %1028 = vmatprep.mubr.msk.f32.mxu0 %vm329_vm0, %v257_v28  ;;  %v518_v28 = vpop.permute.xlu0 %517 }
  0xf6   :  { %1029 = vmatmul.mubr.msk.f32.gmra.mrb[8].mxu0 %vm329_vm0, %v258_v29 }
  0xf7   :  { %1086 = vmatprep.mubr.msk.f32.mxu0 %vm1256_vm1, %v1257_v24 }
 0x1b9   :  { %v1018_v35 = vpop.f32.mrb[0].mxu0 }
 0x1ba   :  { %v432_v36 = vadd.f32 %v1018_v35, %v287_v31  ;;  %v426_v37 = vpop.f32.mrb[1].mxu0  ;;  %v528_v35 = vpop.permute.xlu0 %527 }
 0x1bb   :  { %v427_v38 = vadd.f32 %v426_v37, %v282_v32 }
 0x1bc   :  { %1203 = vtanh.f32 %v432_v36 }
 0x1bd   :  { %1205 = vtanh.f32 %v427_v38  ;;  %v1021_v40 = vpop.f32.mrb[2].mxu0 }
 0x1be   :  { %v442_v42 = vadd.f32 %v1021_v40, %v297_v33  ;;  %v436_v43 = vpop.f32.mrb[3].mxu0  ;;  %v533_v33 = vpop.permute.xlu1 %532 }
 0x1bf   :  { %v437_v44 = vadd.f32 %v436_v43, %v292_v34 }
 0x1c0   :  { %1207 = vtanh.f32 %v442_v42 }
 0x1c1   :  { %1209 = vtanh.f32 %v437_v44  ;;  %v1024_v45 = vpop.f32.mrb[4].mxu0  ;;  %v538_v44 = vpop.permute.xlu0 %537 }
 0x1c2   :  { %v452_v46 = vadd.f32 %v1024_v45, %v307_v39  ;;  %v446_v47 = vpop.f32.mrb[5].mxu0  ;;  %v543_v42 = vpop.permute.xlu1 %542 }
 0x1c3   :  { %v447_v49 = vadd.f32 %v446_v47, %v302_v41 }
 0x1c4   :  { %1211 = vtanh.f32 %v452_v46 }
 0x1c5   :  { %1213 = vtanh.f32 %v447_v49  ;;  %v1027_v51 = vpop.f32.mrb[6].mxu0 }
 0x1c6   :  { %v1204_v52 = vpop.eup %1203  ;;  %v462_v53 = vadd.f32 %v1027_v51, %v317_v48  ;;  %v456_v54 = vpop.f32.mrb[7].mxu0 }
 0x1c7   :  { %v1206_v55 = vpop.eup %1205  ;;  %v457_v56 = vadd.f32 %v456_v54, %v312_v50 }
 0x1c8   :  { %1215 = vtanh.f32 %v462_v53  ;;  %v1121_v57 = vpack.c.bf16 %v1204_v52, %v1206_v55  ;;  %v553_v52 = vpop.permute.xlu1 %552  ;;  %v548_v55 = vpop.permute.xlu0 %547 }
 0x1c9   :  { %1217 = vtanh.f32 %v457_v56  ;;  %v1030_v61 = vpop.f32.mrb[8].mxu0 }
 0x1ca   :  { %v1208_v62 = vpop.eup %1207  ;;  %v472_v2 = vadd.f32 %v1030_v61, %v327_v58  ;;  %v466_v3 = vpop.f32.mrb[9].mxu0  ;;  %1122 = vmatprep.subr.bf16.mxu1 %v1121_v57 }
 0x1cb   :  { %v1210_v6 = vpop.eup %1209  ;;  %v467_v7 = vadd.f32 %v466_v3, %v322_v0  ;;  %1124 = vmatpush3.bf16.msra.mxu1 %v1121_v57 }
 0x1cc   :  { %1219 = vtanh.f32 %v472_v2  ;;  %v1125_v8 = vpack.c.bf16 %v1208_v62, %v1210_v6 }
 0x1cd   :  { %1221 = vtanh.f32 %v467_v7 }
 0x1ce   :  { %v1212_v9 = vpop.eup %1211  ;;  %1126 = vmatprep.subr.bf16.mxu1 %v1125_v8 }
 0x1cf   :  { %v1214_v10 = vpop.eup %1213  ;;  %1128 = vmatpush3.bf16.msra.mxu1 %v1125_v8 }
 0x1d0   :  { %v1129_v11 = vpack.c.bf16 %v1212_v9, %v1214_v10 }
 0x1d2   :  { %v1216_v12 = vpop.eup %1215  ;;  %1130 = vmatprep.subr.bf16.mxu1 %v1129_v11 }
 0x1d3   :  { %v1218_v13 = vpop.eup %1217  ;;  %1132 = vmatpush3.bf16.msra.mxu1 %v1129_v11 }
 0x1d4   :  { %v1133_v59 = vpack.c.bf16 %v1216_v12, %v1218_v13  ;;  %v700_v12 = vld [vmem:[%s1651_s7] sm:$0xff]  ;;  %v703_v13 = vld [vmem:[%s1651_s7 + $0x18] sm:$0xff] }
 0x1d6   :  { %v1220_v14 = vpop.eup %1219  ;;  %1134 = vmatprep.subr.bf16.mxu1 %v1133_v59 }
 0x1d7   :  { %v1222_v15 = vpop.eup %1221  ;;  %1136 = vmatpush3.bf16.msra.mxu1 %v1133_v59  ;;  %v701_v59 = vld [vmem:[%s1651_s7 + $0x8] sm:$0xff] }
 0x1d8   :  { %v1137_v16 = vpack.c.bf16 %v1220_v14, %v1222_v15  ;;  %v704_v14 = vld [vmem:[%s1651_s7 + $0x20] sm:$0xff]  ;;  %v702_v15 = vld [vmem:[%s1651_s7 + $0x10] sm:$0xff] }
 0x1da   :  { %1138 = vmatprep.subr.bf16.mxu1 %v1137_v16 }
 0x1db   :  { %1140 = vmatpush3.bf16.msra.mxu1 %v1137_v16  ;;  %v723_v16 = vpop.permute.xlu0 %722 }
 0x1dc   :  { %1156 = vmatprep.subr.bf16.mxu1 %v1255_v23 }
 0x1de   :  { %1052 = vmatmul.mubr.msk.f32.vlgmr.msra.gmra.mrb[0].mxu1 %vm329_vm0, %v476_v17  ;;  %v728_v17 = vpop.permute.xlu1 %727 }
 0x1df   :  { %1054 = vmatprep.mubr.msk.f32.mxu1 %vm329_vm0, %v477_v18 }
 0x1e2   :  { %1055 = vmatmul.mubr.msk.f32.gmra.mrb[2].mxu1 %vm329_vm0, %v478_v19 }
 0x1e3   :  { %1057 = vmatprep.mubr.msk.f32.mxu1 %vm329_vm0, %v479_v20 }
 0x1e6   :  { %1058 = vmatmul.mubr.msk.f32.gmra.mrb[4].mxu1 %vm329_vm0, %v480_v63 }
 0x1e7   :  { %1060 = vmatprep.mubr.msk.f32.mxu1 %vm329_vm0, %v481_v21 }
 0x1ea   :  { %1061 = vmatmul.mubr.msk.f32.gmra.mrb[6].mxu1 %vm329_vm0, %v482_v22  ;;  %v733_v22 = vpop.permute.xlu0 %732 }
 0x1eb   :  { %1063 = vmatprep.mubr.msk.f32.mxu1 %vm329_vm0, %v483_v4  ;;  %v738_v4 = vpop.permute.xlu1 %737 }
 0x1ee   :  { %1064 = vmatmul.mubr.msk.f32.gmra.mrb[8].mxu1 %vm329_vm0, %v484_v5 }
 0x1ef   :  { %1095 = vmatprep.mubr.msk.f32.mxu1 %vm1256_vm1, %v1257_v24 }
 0x2b1   :  { %v1053_v29 = vpop.f32.mrb[0].mxu1 }
 0x2b2   :  { %v657_v30 = vadd.f32 %v1053_v29, %v513_v25  ;;  %v651_v31 = vpop.f32.mrb[1].mxu1 }
 0x2b3   :  { %v652_v32 = vadd.f32 %v651_v31, %v508_v26 }
 0x2b4   :  { %1223 = vtanh.f32 %v657_v30 }
 0x2b5   :  { %1225 = vtanh.f32 %v652_v32  ;;  %v1056_v34 = vpop.f32.mrb[2].mxu1 }
 0x2b6   :  { %v667_v36 = vadd.f32 %v1056_v34, %v523_v27  ;;  %v661_v37 = vpop.f32.mrb[3].mxu1 }
 0x2b7   :  { %v662_v38 = vadd.f32 %v661_v37, %v518_v28  ;;  %v743_v28 = vpop.permute.xlu0 %742 }
 0x2b8   :  { %1227 = vtanh.f32 %v667_v36 }
 0x2b9   :  { %1229 = vtanh.f32 %v662_v38  ;;  %v1059_v39 = vpop.f32.mrb[4].mxu1 }
 0x2ba   :  { %v677_v40 = vadd.f32 %v1059_v39, %v533_v33  ;;  %v671_v41 = vpop.f32.mrb[5].mxu1  ;;  %v863_v33 = vpop.permute.xlu1 %862 }
 0x2bb   :  { %v672_v43 = vadd.f32 %v671_v41, %v528_v35  ;;  %v868_v36 = vpop.permute.xlu0 %867 }
 0x2bc   :  { %1231 = vtanh.f32 %v677_v40 }
 0x2bd   :  { %1233 = vtanh.f32 %v672_v43  ;;  %v1062_v45 = vpop.f32.mrb[6].mxu1 }
 0x2be   :  { %v1224_v46 = vpop.eup %1223  ;;  %v687_v47 = vadd.f32 %v1062_v45, %v543_v42  ;;  %v681_v48 = vpop.f32.mrb[7].mxu1 }
 0x2bf   :  { %v1226_v49 = vpop.eup %1225  ;;  %v682_v50 = vadd.f32 %v681_v48, %v538_v44  ;;  %v873_v39 = vpop.permute.xlu1 %872 }
 0x2c0   :  { %1235 = vtanh.f32 %v687_v47  ;;  %v1142_v51 = vpack.c.bf16 %v1224_v46, %v1226_v49  ;;  %v878_v45 = vpop.permute.xlu0 %877 }
 0x2c1   :  { %1237 = vtanh.f32 %v682_v50  ;;  %v1065_v53 = vpop.f32.mrb[8].mxu1 }
 0x2c2   :  { %v1228_v54 = vpop.eup %1227  ;;  %v697_v56 = vadd.f32 %v1065_v53, %v553_v52  ;;  %v691_v57 = vpop.f32.mrb[9].mxu1  ;;  %1143 = vmatpush3.bf16.msra.mxu0 %v1142_v51  ;;  %1161 = vmatpush3.bf16.msra.mxu1 %v1142_v51 }
 0x2c3   :  { %v1230_v58 = vpop.eup %1229  ;;  %v692_v61 = vadd.f32 %v691_v57, %v548_v55  ;;  %1144 = vmatprep.subr.bf16.mxu0 %v1255_v23  ;;  %1157 = vmatprep.subr.bf16.mxu1 %v1255_v23  ;;  %v883_v48 = vpop.permute.xlu1 %882 }
 0x2c4   :  { %1239 = vtanh.f32 %v697_v56  ;;  %v1145_v62 = vpack.c.bf16 %v1228_v54, %v1230_v58  ;;  %v904_v56 = vpop.permute.xlu0 %903 }
 0x2c5   :  { %1241 = vtanh.f32 %v692_v61  ;;  %v909_v58 = vrot.slane %v904_v56, %v103_v1 }
 0x2c6   :  { %v1232_v0 = vpop.eup %1231  ;;  %1146 = vmatpush3.bf16.msra.mxu0 %v1145_v62  ;;  %1162 = vmatpush3.bf16.msra.mxu1 %v1145_v62 }
 0x2c7   :  { %v1234_v2 = vpop.eup %1233  ;;  %1147 = vmatprep.subr.bf16.mxu0 %v1255_v23  ;;  %1158 = vmatprep.subr.bf16.mxu1 %v1255_v23 }
 0x2c8   :  { %v1148_v3 = vpack.c.bf16 %v1232_v0, %v1234_v2 }
 0x2ca   :  { %v1236_v6 = vpop.eup %1235  ;;  %1149 = vmatpush3.bf16.msra.mxu0 %v1148_v3  ;;  %1163 = vmatpush3.bf16.msra.mxu1 %v1148_v3 }
 0x2cb   :  { %v1238_v7 = vpop.eup %1237  ;;  %1150 = vmatprep.subr.bf16.mxu0 %v1255_v23  ;;  %1159 = vmatprep.subr.bf16.mxu1 %v1255_v23 }
 0x2cc   :  { %v1151_v8 = vpack.c.bf16 %v1236_v6, %v1238_v7 }
 0x2ce   :  { %v1240_v9 = vpop.eup %1239  ;;  %1152 = vmatpush3.bf16.msra.mxu0 %v1151_v8  ;;  %1164 = vmatpush3.bf16.msra.mxu1 %v1151_v8 }
 0x2cf   :  { %v1242_v10 = vpop.eup %1241  ;;  %1153 = vmatprep.subr.bf16.mxu0 %v1255_v23  ;;  %1160 = vmatprep.subr.bf16.mxu1 %v1255_v23 }
 0x2d0   :  { %v1154_v11 = vpack.c.bf16 %v1240_v9, %v1242_v10 }
 0x2d2   :  { %1155 = vmatpush3.bf16.msra.mxu0 %v1154_v11  ;;  %1165 = vmatpush3.bf16.msra.mxu1 %v1154_v11 }
 0x2d5   :  { %1087 = vmatmul.mubr.msk.f32.vlgmr.msra.gmra.mrb[10].mxu0 %vm329_vm0, %v700_v12  ;;  %1096 = vmatmul.mubr.msk.f32.vlgmr.msra.gmra.mrb[10].mxu1 %vm329_vm0, %v703_v13 }
 0x2d6   :  { %1089 = vmatprep.mubr.msk.f32.mxu0 %vm1256_vm1, %v1257_v24  ;;  %1098 = vmatprep.mubr.msk.f32.mxu1 %vm1256_vm1, %v1257_v24 }
 0x2d9   :  { %1090 = vmatmul.mubr.msk.f32.gmra.mrb[12].mxu0 %vm329_vm0, %v701_v59  ;;  %1099 = vmatmul.mubr.msk.f32.gmra.mrb[12].mxu1 %vm329_vm0, %v704_v14 }
 0x2da   :  { %1092 = vmatprep.mubr.msk.f32.mxu0 %vm1256_vm1, %v1257_v24 }
 0x2dd   :  { %1093 = vmatmul.mubr.msk.f32.gmra.mrb[14].mxu0 %vm329_vm0, %v702_v15 }
 0x3a8   :  { %v826_v18 = vpop.f32.mrb[10].mxu0  ;;  %v841_v19 = vpop.f32.mrb[10].mxu1 }
 0x3a9   :  { %v827_v20 = vadd.f32 %v826_v18, %v723_v16  ;;  %v1088_v63 = vpop.f32.mrb[11].mxu0  ;;  %v1097_v21 = vpop.f32.mrb[11].mxu1  ;;  %v842_v27 = vadd.f32 %v841_v19, %v738_v4 }
 0x3ab   :  { %1243 = vtanh.f32 %v827_v20 }
 0x3ac   :  { %v831_v5 = vpop.f32.mrb[12].mxu0  ;;  %v846_v23 = vpop.f32.mrb[12].mxu1 }
 0x3ad   :  { %v832_v25 = vadd.f32 %v831_v5, %v728_v17  ;;  %v1091_v24 = vpop.f32.mrb[13].mxu0  ;;  %v1100_v26 = vpop.f32.mrb[13].mxu1  ;;  %v847_v30 = vadd.f32 %v846_v23, %v743_v28 }
 0x3af   :  { %1245 = vtanh.f32 %v832_v25 }
 0x3b0   :  { %v836_v29 = vpop.f32.mrb[14].mxu0  ;;  %1247 = vtanh.f32 %v842_v27 }
 0x3b1   :  { %v837_v31 = vadd.f32 %v836_v29, %v733_v22  ;;  %v1094_v32 = vpop.f32.mrb[15].mxu0 }
 0x3b3   :  { %1249 = vtanh.f32 %v837_v31 }
 0x3b4   :  { %1251 = vtanh.f32 %v847_v30 }
 0x3b5   :  { %v1244_v34 = vpop.eup %1243 }
 0x3b6   :  { %v885_v37 = vmul.f32 %v1244_v34, %v863_v33 }
 0x3b9   :  { %v1246_v35 = vpop.eup %1245 }
 0x3ba   :  { %v886_v38 = vmul.f32 %v1246_v35, %v868_v36  ;;  %v1248_v40 = vpop.eup %1247 }
 0x3bb   :  { %v888_v46 = vmul.f32 %v1248_v40, %v878_v45 }
 0x3bc   :  { %v890_v41 = vadd.f32 %v886_v38, %v885_v37 }
 0x3bd   :  { %v1250_v42 = vpop.eup %1249 }
 0x3be   :  { %v887_v43 = vmul.f32 %v1250_v42, %v873_v39  ;;  %v1252_v44 = vpop.eup %1251 }
 0x3bf   :  { %v889_v49 = vmul.f32 %v1252_v44, %v883_v48 }
 0x3c0   :  { %v891_v47 = vadd.f32 %v890_v41, %v887_v43 }
 0x3c2   :  { %v892_v50 = vadd.f32 %v891_v47, %v888_v46 }
 0x3c4   :  { %v893_v51 = vadd.f32 %v892_v50, %v889_v49 }
 0x3c6   :  { %v894_v52 = vrot.slane %v893_v51, 4 }
 0x3c8   :  { %v895_v53 = vadd.f32 %v894_v52, %v893_v51 }
 0x3ca   :  { %v896_v54 = vrot.slane %v895_v53, 2 }
 0x3cc   :  { %v897_v55 = vadd.f32 %v896_v54, %v895_v53 }
 0x3ce   :  { %v898_v57 = vrot.slane %v897_v55, 1 }
 0x3d0   :  { %v899_v61 = vadd.f32 %v898_v57, %v897_v55 }
 0x3d2   :  { %v910_v62 = vadd.f32 %v909_v58, %v899_v61 }
 0x3d4   :  { %911 = vst [vmem:[%s1652_s11] sm:$0x1] %v910_v62 }

</bundles_post_ra>
